<compile_context>
chip_gen: v6e
topology: v6e:2x2x1
jax: 0.10.0
libtpu: 0.0.40
codegen_flags: <defaults>
</compile_context>

<pallas_src>
import jax
import jax.numpy as jnp
from jax.experimental import pallas as pl
from jax.experimental.pallas import tpu as pltpu


def mlp_kernel(x_ref,
               w1_ref, b1_ref,
               w2_ref, b2_ref,
               w3_ref, b3_ref,
               w4_ref, b4_ref,
               o_ref):
    # In-kernel bf16 cast of the batch tile (cheap VPU pack, hidden under the MXU);
    # avoids a separate wrapper-side convert pass over x in HBM.
    x = x_ref[...].astype(jnp.bfloat16)                       # (tile_b, 42)

    # Layer 0: Linear(42 -> 32) + ReLU, feature-major:
    #   (32, 42) . (tile_b, 42)^T -> (32, tile_b)  (contraction over the shared
    #   42-feature axis, i.e. dot-with-trans_b, the q@k.T pattern), f32 MXU accumulate.
    h = jax.lax.dot_general(w1_ref[...], x,
                            (((1,), (1,)), ((), ())),
                            preferred_element_type=jnp.float32)
    h = jnp.maximum(h + b1_ref[...], 0.0)                     # (32, tile_b) f32, lane-dense

    # Layer 1: Linear(32 -> 16) + ReLU.   (16, 32) @ (32, tile_b) -> (16, tile_b)
    h = jnp.dot(w2_ref[...], h.astype(jnp.bfloat16),
                preferred_element_type=jnp.float32)
    h = jnp.maximum(h + b2_ref[...], 0.0)

    # Layer 2: Linear(16 -> 8) + ReLU.    (8, 16) @ (16, tile_b) -> (8, tile_b)
    h = jnp.dot(w3_ref[...], h.astype(jnp.bfloat16),
                preferred_element_type=jnp.float32)
    h = jnp.maximum(h + b3_ref[...], 0.0)                     # (8, tile_b) f32

    # Layer 3: Linear(8 -> 1), no activation, f32.  An M=1, K=8 MXU matmul would only
    # waste a weight swap, so do a VPU broadcast-multiply + sublane reduce instead.
    out = jnp.sum(h * w4_ref[...], axis=0, keepdims=True) + b4_ref[...]   # (1, tile_b)
    o_ref[...] = out.astype(o_ref.dtype)                      # unmasked lane-dense store


def _round_up(v, m):
    return ((v + m - 1) // m) * m


def ported_mlp_forward(x, params, *, tile_b=8192, vmem_limit_bytes=None):
    """Default forward pass of PortedMLPClassifier.

    x: (B, 42) float32.
    params: [(w1, b1), ..., (w4, b4)] in PyTorch nn.Linear layout: w (out, in) f32,
            b (out,) f32.
    Returns logits of shape (B, 1) float32.
    """
    (w1, b1), (w2, b2), (w3, b3), (w4, b4) = params
    B, F = x.shape
    assert F == 42

    # ---- batch-tile selection -------------------------------------------------------
    # Multi-tile path: tile_b must be a multiple of 128 so the (1, tile_b) output blocks
    # and all (feat, tile_b) intermediates are lane-dense / unmasked.
    tile_b = max(128, _round_up(tile_b, 128))
    if tile_b >= B:
        if B > 256:
            # One tile would cover the whole batch: split in two so "parallel" can shard
            # the grid across the 2 TensorCores on v7x (negligible cost on v5e/v6e).
            tile_b = _round_up(pl.cdiv(B, 2), 128)
        else:
            # Tiny batch: single sublane-aligned tile.  With one grid step the output
            # block equals the full array, so no 128-lane-multiple requirement applies.
            tile_b = _round_up(B, 8)
    num_tiles = pl.cdiv(B, tile_b)
    padded_b = num_tiles * tile_b

    # ---- weights: tiny one-time casts (not the big-x anti-pattern) -------------------
    # Hidden-layer weights feed the MXU in bf16; biases are (out, 1) f32 columns so they
    # lane-broadcast over the feature-major activations.  Last layer stays f32.
    w1b = w1.astype(jnp.bfloat16)                      # (32, 42)
    w2b = w2.astype(jnp.bfloat16)                      # (16, 32)
    w3b = w3.astype(jnp.bfloat16)                      # (8, 16)
    w4c = w4.reshape(8, 1).astype(jnp.float32)         # (8, 1) column
    b1c = b1.reshape(-1, 1).astype(jnp.float32)        # (32, 1)
    b2c = b2.reshape(-1, 1).astype(jnp.float32)        # (16, 1)
    b3c = b3.reshape(-1, 1).astype(jnp.float32)        # (8, 1)
    b4c = b4.reshape(-1, 1).astype(jnp.float32)        # (1, 1)

    x_spec = pl.BlockSpec((tile_b, 42), lambda i: (i, 0))
    out_spec = pl.BlockSpec((1, tile_b), lambda i: (0, i))     # lane-dense output row

    def resident_spec(shape):
        # Constant index_map -> block stays resident in VMEM across the whole grid.
        return pl.BlockSpec(shape, lambda i, _nd=len(shape): (0,) * _nd)

    if vmem_limit_bytes is None:
        # Explicit limit derived from tile_b: f32 x double-buffer (42 lanes pad to 128)
        # + output double-buffer + generous headroom for lane-dense intermediates/spill.
        est = 2 * tile_b * 128 * 4 + 2 * 8 * tile_b * 4 + tile_b * 512
        vmem_limit_bytes = min(100 * 1024 * 1024, max(32 * 1024 * 1024, 2 * est))

    flops_per_row = 2 * (42 * 32 + 32 * 16 + 16 * 8 + 8 * 1)
    weight_bytes = (w1b.size + w2b.size + w3b.size) * 2 + w4c.size * 4 \
        + (b1c.size + b2c.size + b3c.size + b4c.size) * 4
    cost = pl.CostEstimate(
        flops=flops_per_row * B,
        transcendentals=0,
        bytes_accessed=B * (42 * 4 + 4) + weight_bytes,   # x read as f32 in-kernel, out f32
    )

    out = pl.pallas_call(
        mlp_kernel,
        out_shape=jax.ShapeDtypeStruct((1, padded_b), jnp.float32),
        grid_spec=pltpu.PrefetchScalarGridSpec(
            num_scalar_prefetch=0,
            grid=(num_tiles,),
            in_specs=[
                x_spec,
                resident_spec(w1b.shape), resident_spec(b1c.shape),
                resident_spec(w2b.shape), resident_spec(b2c.shape),
                resident_spec(w3b.shape), resident_spec(b3c.shape),
                resident_spec(w4c.shape), resident_spec(b4c.shape),
            ],
            out_specs=out_spec,
        ),
        compiler_params=pltpu.CompilerParams(
            # Independent batch tiles -> shardable across the 2 TCs on v7x
            # (no-op on single-TC v5e/v6e).
            dimension_semantics=("parallel",),
            vmem_limit_bytes=vmem_limit_bytes,
        ),
        cost_estimate=cost,
    )(x, w1b, b1c, w2b, b2c, w3b, b3c, w4c, b4c)

    # (1, padded_b) -> (B, 1).  Padded tail columns hold unspecified data but batch rows
    # are fully independent through every layer, so they never contaminate valid rows;
    # they are dropped here.  Callers that keep B % tile_b == 0 can consume the (1, B)
    # buffer directly and skip this small slice/copy.
    return out[0, :B].reshape(B, 1)


def init_params(key):
    """Deterministic init matching PyTorch nn.Linear: w (out, in), b (out,), U(+-1/sqrt(in))."""
    dims = [(42, 32), (32, 16), (16, 8), (8, 1)]
    params = []
    for fan_in, fan_out in dims:
        key, kw, kb = jax.random.split(key, 3)
        bound = fan_in ** -0.5
        w = jax.random.uniform(kw, (fan_out, fan_in), jnp.float32, -bound, bound)
        b = jax.random.uniform(kb, (fan_out,), jnp.float32, -bound, bound)
        params.append((w, b))
    return params


def reference_forward(x, params):
    h = x
    for i, (w, b) in enumerate(params):
        h = h @ w.T + b
        if i < 3:
            h = jnp.maximum(h, 0.0)
    return h


if __name__ == "__main__":
    key = jax.random.PRNGKey(0)
    key, kx1, kx2 = jax.random.split(key, 3)
    params = init_params(key)

    # Case 1: tiny batch -> single exact sublane-aligned tile.
    b1_ = 8
    x1 = jax.random.normal(kx1, (b1_, 42), jnp.float32)
    out1 = jax.block_until_ready(ported_mlp_forward(x1, params))
    ref1 = reference_forward(x1, params)
    assert out1.shape == (b1_, 1)
    assert jnp.allclose(out1, ref1, atol=3e-2, rtol=3e-2), (out1, ref1)

    # Case 2: multi-tile grid with a partial last block (B=300, tile_b=128 -> 3 tiles).
    b2_ = 300
    x2 = jax.random.normal(kx2, (b2_, 42), jnp.float32)
    out2 = jax.block_until_ready(ported_mlp_forward(x2, params, tile_b=128))
    ref2 = reference_forward(x2, params)
    assert out2.shape == (b2_, 1)
    assert jnp.allclose(out2, ref2, atol=3e-2, rtol=3e-2), (out2, ref2)

    print("KERNEL_OK")
</pallas_src>

<mosaic_0001>
module attributes {stable_mosaic.version = 11 : i64} {
  func.func @mlp_kernel(%arg0: i32, %arg1: memref<8x42xf32, #tpu.memory_space<vmem>>, %arg2: memref<32x42xbf16, #tpu.memory_space<vmem>>, %arg3: memref<32x1xf32, #tpu.memory_space<vmem>>, %arg4: memref<16x32xbf16, #tpu.memory_space<vmem>>, %arg5: memref<16x1xf32, #tpu.memory_space<vmem>>, %arg6: memref<8x16xbf16, #tpu.memory_space<vmem>>, %arg7: memref<8x1xf32, #tpu.memory_space<vmem>>, %arg8: memref<8x1xf32, #tpu.memory_space<vmem>>, %arg9: memref<1x1xf32, #tpu.memory_space<vmem>>, %arg10: memref<1x8xf32, #tpu.memory_space<vmem>>) attributes {dimension_semantics = [#tpu.dimension_semantics<parallel>], iteration_bounds = array<i64: 1>, scalar_prefetch = 0 : i64, scratch_operands = 0 : i64, tpu.core_type = #tpu.core_type<tc>, window_params = [{transform_indices = @transform_0, window_bounds = array<i64: 8, 42>}, {pipeline_mode = #tpu.pipeline_mode<synchronous>, transform_indices = @transform_1, window_bounds = array<i64: 32, 42>}, {pipeline_mode = #tpu.pipeline_mode<synchronous>, transform_indices = @transform_2, window_bounds = array<i64: 32, 1>}, {pipeline_mode = #tpu.pipeline_mode<synchronous>, transform_indices = @transform_3, window_bounds = array<i64: 16, 32>}, {pipeline_mode = #tpu.pipeline_mode<synchronous>, transform_indices = @transform_4, window_bounds = array<i64: 16, 1>}, {pipeline_mode = #tpu.pipeline_mode<synchronous>, transform_indices = @transform_5, window_bounds = array<i64: 8, 16>}, {pipeline_mode = #tpu.pipeline_mode<synchronous>, transform_indices = @transform_6, window_bounds = array<i64: 8, 1>}, {pipeline_mode = #tpu.pipeline_mode<synchronous>, transform_indices = @transform_7, window_bounds = array<i64: 8, 1>}, {pipeline_mode = #tpu.pipeline_mode<synchronous>, transform_indices = @transform_8, window_bounds = array<i64: 1, 1>}, {transform_indices = @transform_9, window_bounds = array<i64: 1, 8>}]} {
    %c0 = arith.constant 0 : index
    %c0_0 = arith.constant 0 : index
    %0 = vector.load %arg1[%c0, %c0_0] : memref<8x42xf32, #tpu.memory_space<vmem>>, vector<8x42xf32>
    %1 = arith.truncf %0 : vector<8x42xf32> to vector<8x42xbf16>
    %c0_1 = arith.constant 0 : index
    %c0_2 = arith.constant 0 : index
    %2 = vector.load %arg2[%c0_1, %c0_2] : memref<32x42xbf16, #tpu.memory_space<vmem>>, vector<32x42xbf16>
    %cst = arith.constant dense<0.000000e+00> : vector<32x8xf32>
    %3 = tpu.matmul %2, %1, %cst {dimension_numbers = #tpu.dot_dimension_numbers<[1], [1], [0], [0], [0, 0, 1, 0], [], []>} : vector<32x42xbf16>, vector<8x42xbf16>, vector<32x8xf32> -> vector<32x8xf32>
    %c0_3 = arith.constant 0 : index
    %c0_4 = arith.constant 0 : index
    %4 = vector.load %arg3[%c0_3, %c0_4] : memref<32x1xf32, #tpu.memory_space<vmem>>, vector<32x1xf32>
    %5 = vector.broadcast %4 : vector<32x1xf32> to vector<32x8xf32>
    %6 = arith.addf %3, %5 : vector<32x8xf32>
    %cst_5 = arith.constant 0.000000e+00 : f32
    %7 = vector.broadcast %cst_5 : f32 to vector<32x8xf32>
    %8 = arith.maximumf %6, %7 : vector<32x8xf32>
    %c0_6 = arith.constant 0 : index
    %c0_7 = arith.constant 0 : index
    %9 = vector.load %arg4[%c0_6, %c0_7] : memref<16x32xbf16, #tpu.memory_space<vmem>>, vector<16x32xbf16>
    %10 = arith.truncf %8 : vector<32x8xf32> to vector<32x8xbf16>
    %cst_8 = arith.constant dense<0.000000e+00> : vector<16x8xf32>
    %11 = tpu.matmul %9, %10, %cst_8 {dimension_numbers = #tpu.dot_dimension_numbers<[1], [0], [0], [1], [0, 0, 1, 1], [], []>} : vector<16x32xbf16>, vector<32x8xbf16>, vector<16x8xf32> -> vector<16x8xf32>
    %c0_9 = arith.constant 0 : index
    %c0_10 = arith.constant 0 : index
    %12 = vector.load %arg5[%c0_9, %c0_10] : memref<16x1xf32, #tpu.memory_space<vmem>>, vector<16x1xf32>
    %13 = vector.broadcast %12 : vector<16x1xf32> to vector<16x8xf32>
    %14 = arith.addf %11, %13 : vector<16x8xf32>
    %cst_11 = arith.constant 0.000000e+00 : f32
    %15 = vector.broadcast %cst_11 : f32 to vector<16x8xf32>
    %16 = arith.maximumf %14, %15 : vector<16x8xf32>
    %c0_12 = arith.constant 0 : index
    %c0_13 = arith.constant 0 : index
    %17 = vector.load %arg6[%c0_12, %c0_13] : memref<8x16xbf16, #tpu.memory_space<vmem>>, vector<8x16xbf16>
    %18 = arith.truncf %16 : vector<16x8xf32> to vector<16x8xbf16>
    %cst_14 = arith.constant dense<0.000000e+00> : vector<8x8xf32>
    %19 = tpu.matmul %17, %18, %cst_14 {dimension_numbers = #tpu.dot_dimension_numbers<[1], [0], [0], [1], [0, 0, 1, 1], [], []>} : vector<8x16xbf16>, vector<16x8xbf16>, vector<8x8xf32> -> vector<8x8xf32>
    %c0_15 = arith.constant 0 : index
    %c0_16 = arith.constant 0 : index
    %20 = vector.load %arg7[%c0_15, %c0_16] : memref<8x1xf32, #tpu.memory_space<vmem>>, vector<8x1xf32>
    %21 = vector.broadcast %20 : vector<8x1xf32> to vector<8x8xf32>
    %22 = arith.addf %19, %21 : vector<8x8xf32>
    %cst_17 = arith.constant 0.000000e+00 : f32
    %23 = vector.broadcast %cst_17 : f32 to vector<8x8xf32>
    %24 = arith.maximumf %22, %23 : vector<8x8xf32>
    %c0_18 = arith.constant 0 : index
    %c0_19 = arith.constant 0 : index
    %25 = vector.load %arg8[%c0_18, %c0_19] : memref<8x1xf32, #tpu.memory_space<vmem>>, vector<8x1xf32>
    %26 = vector.broadcast %25 : vector<8x1xf32> to vector<8x8xf32>
    %27 = arith.mulf %24, %26 : vector<8x8xf32>
    %cst_20 = arith.constant dense<0.000000e+00> : vector<8xf32>
    %28 = vector.multi_reduction <add>, %27, %cst_20 [0] : vector<8x8xf32> to vector<8xf32>
    %29 = vector.shape_cast %28 : vector<8xf32> to vector<1x8xf32>
    %c0_21 = arith.constant 0 : index
    %c0_22 = arith.constant 0 : index
    %30 = vector.load %arg9[%c0_21, %c0_22] : memref<1x1xf32, #tpu.memory_space<vmem>>, vector<1x1xf32>
    %31 = vector.broadcast %30 : vector<1x1xf32> to vector<1x8xf32>
    %32 = arith.addf %29, %31 : vector<1x8xf32>
    %c0_23 = arith.constant 0 : index
    %c0_24 = arith.constant 0 : index
    %33 = vector.load %arg10[%c0_23, %c0_24] : memref<1x8xf32, #tpu.memory_space<vmem>>, vector<1x8xf32>
    tpu.vector_store %arg10[%c0_23, %c0_24], %32 {strides = array<i32>} : memref<1x8xf32, #tpu.memory_space<vmem>>, vector<1x8xf32>,
    return
  }
  func.func @transform_0(%arg0: i32) -> (i32, i32) {
    %c0_i32 = arith.constant 0 : i32
    %c0_i32_0 = arith.constant 0 : i32
    return %arg0, %c0_i32 : i32, i32
  }
  func.func @transform_1(%arg0: i32) -> (i32, i32) {
    %c0_i32 = arith.constant 0 : i32
    %c0_i32_0 = arith.constant 0 : i32
    %c0_i32_1 = arith.constant 0 : i32
    return %c0_i32, %c0_i32_0 : i32, i32
  }
  func.func @transform_2(%arg0: i32) -> (i32, i32) {
    %c0_i32 = arith.constant 0 : i32
    %c0_i32_0 = arith.constant 0 : i32
    %c0_i32_1 = arith.constant 0 : i32
    return %c0_i32, %c0_i32_0 : i32, i32
  }
  func.func @transform_3(%arg0: i32) -> (i32, i32) {
    %c0_i32 = arith.constant 0 : i32
    %c0_i32_0 = arith.constant 0 : i32
    %c0_i32_1 = arith.constant 0 : i32
    return %c0_i32, %c0_i32_0 : i32, i32
  }
  func.func @transform_4(%arg0: i32) -> (i32, i32) {
    %c0_i32 = arith.constant 0 : i32
    %c0_i32_0 = arith.constant 0 : i32
    %c0_i32_1 = arith.constant 0 : i32
    return %c0_i32, %c0_i32_0 : i32, i32
  }
  func.func @transform_5(%arg0: i32) -> (i32, i32) {
    %c0_i32 = arith.constant 0 : i32
    %c0_i32_0 = arith.constant 0 : i32
    %c0_i32_1 = arith.constant 0 : i32
    return %c0_i32, %c0_i32_0 : i32, i32
  }
  func.func @transform_6(%arg0: i32) -> (i32, i32) {
    %c0_i32 = arith.constant 0 : i32
    %c0_i32_0 = arith.constant 0 : i32
    %c0_i32_1 = arith.constant 0 : i32
    return %c0_i32, %c0_i32_0 : i32, i32
  }
  func.func @transform_7(%arg0: i32) -> (i32, i32) {
    %c0_i32 = arith.constant 0 : i32
    %c0_i32_0 = arith.constant 0 : i32
    %c0_i32_1 = arith.constant 0 : i32
    return %c0_i32, %c0_i32_0 : i32, i32
  }
  func.func @transform_8(%arg0: i32) -> (i32, i32) {
    %c0_i32 = arith.constant 0 : i32
    %c0_i32_0 = arith.constant 0 : i32
    %c0_i32_1 = arith.constant 0 : i32
    return %c0_i32, %c0_i32_0 : i32, i32
  }
  func.func @transform_9(%arg0: i32) -> (i32, i32) {
    %c0_i32 = arith.constant 0 : i32
    %c0_i32_0 = arith.constant 0 : i32
    return %c0_i32, %arg0 : i32, i32
  }
}

</mosaic_0001>

<bundles_post_ra>
// kernel: tpu_custom_call.1
= control target key start
LH: loop header
LB: loop body
LE: loop exit
PB: predicated region body
PF: predicated region fallthrough
CT: control target
= control target key end

     0   :  { %s472_s0 = inlined_call_operand.vmem [shape: f32[8,42], index: 0, kind: input, shape index: {}]   ;;  %s473_s1 = inlined_call_operand.vmem [shape: bf16[32,42], index: 1, kind: input, shape index: {}]   ;;  %s474_s2 = inlined_call_operand.vmem [shape: f32[32,1], index: 2, kind: input, shape index: {}]   ;;  %s475_s3 = inlined_call_operand.vmem [shape: bf16[16,32], index: 3, kind: input, shape index: {}]   ;;  %s476_s4 = inlined_call_operand.vmem [shape: f32[16,1], index: 4, kind: input, shape index: {}]   ;;  %s477_s5 = inlined_call_operand.vmem [shape: bf16[8,16], index: 5, kind: input, shape index: {}]   ;;  %s478_s6 = inlined_call_operand.vmem [shape: f32[8,1], index: 6, kind: input, shape index: {}]   ;;  %s479_s7 = inlined_call_operand.vmem [shape: f32[8,1], index: 7, kind: input, shape index: {}]   ;;  %s480_s8 = inlined_call_operand.<no memory space> [shape: f32[1,1], index: 8, kind: input, shape index: {}]   ;;  %s481_s9 = inlined_call_operand.hbm [shape: f32[1,8], index: 9, kind: output, shape index: {}]  }
   0x1   :  { %v14_v0 = vstv %s480_s8 }
   0x2   :  { %15 = vst [vmem:[#allocation2] sm:$0x1] %v14_v0 }
   0x3   :  { %v36_v1 = vld [vmem:[%s472_s0] sm:$0xff]  ;;  %vm76_vm0 = vcmask 343040   ;;  %v369_v4 = vmov 0   ;;  %v44_v5 = vld [vmem:[%s474_s2 + $0x10] sm:$0xff]  ;;  %v45_v8 = vld [vmem:[%s474_s2 + $0x18] sm:$0xff] }
   0x4   :  { %v37_v2 = vpack.c.bf16 %v36_v1, %v36_v1  ;;  %v344_v3 = vld [vmem:[%s473_s1] sm:$0xff]   ;;  %342 = vset.pattern.permute.xlu0 %v369_v4  ;;  %343 = vset.pattern.permute.xlu1 %v369_v4  ;;  %v43_v9 = vld [vmem:[%s474_s2 + $0x8] sm:$0xff] }
   0x5   :  { %319 = vmatprep.mubr.msk.bf16.mxu0 %vm76_vm0, %v344_v3  ;;  %v42_v7 = vld [vmem:[%s474_s2] sm:$0xff]  ;;  %58 = vperm.xlu0 %342, %v44_v5  }
   0x6   :  { %337 = vmatprep.subr.msk.bf16.mxu0 %vm76_vm0, %v37_v2  ;;  %v84_v6 = vsel %vm76_vm0, %v37_v2, 0  ;;  %48 = vperm.xlu1 %343, %v42_v7  }
   0x7   :  { %318 = vmatpush3.bf16.xpose.msra.mxu0 %v84_v6 }
   0x8   :  { %16 = vsyncpa [#allocation4], 0  ;;  %v345_v10 = vld [vmem:[%s473_s1 + $0x8] sm:$0xff]   ;;  %v143_v11 = vld [vmem:[%s476_s4] sm:$0xff]  ;;  %v370_v16 = vmov 0.0   ;;  %vm371_vm1 = vmmov 0   ;;  %v281_v56 = vlaneseq }
   0x9   :  { %63 = vperm.xlu0 %342, %v45_v8   ;;  %v144_v12 = vld [vmem:[%s476_s4 + $0x8] sm:$0xff]  ;;  %v209_v13 = vld [vmem:[%s478_s6] sm:$0xff]  ;;  %323 = vmatprep.subr.bf16.mxu1 %v370_v16  ;;  %vm160_vm2 = vcmask 261120   ;;  %vm215_vm3 = vcmask 130048   ;;  %vm267_vm4 = vcmask 64512   ;;  %vm286_vm5 = vcmask 57344  }
   0xa   :  { %53 = vperm.xlu1 %343, %v43_v9   ;;  %v260_v14 = vld [vmem:[%s479_s7] sm:$0xff]  ;;  %331 = vmatprep.subr.bf16.mxu0 %v370_v16  ;;  %v282_v60 = vshrl.u32 %v281_v56, 7 }
   0xb   :  { %v275_v15 = vld [vmem:[#allocation2] sm:$0x1]  ;;  %327 = vmatprep.mubr.msk.bf16.mxu1 %vm371_vm1, %v370_v16 }
   0xc   :  { %v346_v35 = vld [vmem:[%s475_s3] sm:$0xff]   ;;  %v283_v63 = vsub.s32 0, %v282_v60  ;;  %s372_s3 = smov [#allocation3]  }
   0xd   :  { %147 = vperm.xlu0 %342, %v143_v11   ;;  %v207_v47 = vld [vmem:[%s477_s5] sm:$0xf]  ;;  %s294_s5 = sshll.u32 %s372_s3, 4  ;;  %s295_s5 = int_to_ptr.vmem [resolvable:$true] %s294_s5 }
   0xe   :  { %320 = vmatmul.mubr.msk.bf16.vlgmr.msra.gmra.mxu0 %vm76_vm0, %v345_v10  ;;  %152 = vperm.xlu1 %343, %v144_v12   ;;  %s347_s30 = scalar_lea.vmem %s295_s5, 16  ;;  %s351_s10 = scalar_lea.vmem %s295_s5, 32 }
   0xf   :  { %333 = vmatprep.mubr.msk.bf16.mxu0 %vm371_vm1, %v370_v16  ;;  %p348_p0 = scmp.ne.s32.totalorder %s295_s5, %s347_s30  ;;  %p352_p1 = scmp.lt.s32.totalorder %s295_s5, %s295_s5 }
  0x10   :  { %p353_p2 = scmp.lt.s32.totalorder %s351_s10, %s347_s30 }
  0x11   :  { %212 = vperm.xlu0 %342, %v209_v13  }
  0x12   :  { %263 = vperm.xlu1 %343, %v260_v14   ;;  %p354_p3 = por %p353_p2, %p352_p1 }
  0x14   :  { %p355_p4 = pnand %p354_p3, %p348_p0 }
  0x15   :  { %278 = vperm.xlu0 %342, %v275_v15  }
  0x80   :  { %v59_v17 = vpop.permute.xlu0 %58 }
  0x81   :  { %v49_v18 = vpop.permute.xlu1 %48 }
  0x84   :  { %v64_v22 = vpop.permute.xlu0 %63 }
  0x85   :  { %v54_v25 = vpop.permute.xlu1 %53 }
  0x88   :  { %v148_v37 = vpop.permute.xlu0 %147 }
  0x89   :  { %v153_v40 = vpop.permute.xlu1 %152 }
  0x8c   :  { %v213_v48 = vpop.permute.xlu0 %212 }
  0x8d   :  { %v264_v53 = vpop.permute.xlu1 %263 }
  0x90   :  { %v279_v1 = vpop.permute.xlu0 %278 }
  0x91   :  { %v284_v3 = vrot.slane %v279_v1, %v283_v63 }
  0xce   :  { %v321_v19 = vpop.f32.mrf.mxu0 }
  0xcf   :  { %v129_v21 = vadd.f32 %v321_v19, %v59_v17 }
  0xd0   :  { %v120_v20 = vpop.f32.mrf.mxu0 }
  0xd1   :  { %v137_v27 = vmax.f32 %v129_v21, 0.0  ;;  %v121_v28 = vadd.f32 %v120_v20, %v49_v18 }
  0xd2   :  { %v322_v23 = vpop.f32.mrf.mxu0 }
  0xd3   :  { %v132_v24 = vadd.f32 %v322_v23, %v64_v22  ;;  %v135_v33 = vmax.f32 %v121_v28, 0.0 }
  0xd4   :  { %v123_v26 = vpop.f32.mrf.mxu0 }
  0xd5   :  { %v138_v29 = vmax.f32 %v132_v24, 0.0  ;;  %v124_v30 = vadd.f32 %v123_v26, %v54_v25 }
  0xd7   :  { %v136_v31 = vmax.f32 %v124_v30, 0.0  ;;  %v142_v32 = vpack.c.bf16 %v138_v29, %v137_v27 }
  0xd9   :  { %324 = vmatpush3.bf16.msra.mxu1 %v142_v32  ;;  %v141_v34 = vpack.c.bf16 %v136_v31, %v135_v33 }
  0xda   :  { %325 = vmatprep.subr.bf16.mxu1 %v370_v16 }
  0xdd   :  { %326 = vmatpush3.bf16.msra.mxu1 %v141_v34 }
  0xe0   :  { %328 = vmatmul.mubr.msk.bf16.vlgmr.msra.gmra.mxu1 %vm160_vm2, %v346_v35 }
 0x1a0   :  { %v198_v36 = vpop.f32.mrf.mxu1 }
 0x1a1   :  { %v199_v39 = vadd.f32 %v198_v36, %v148_v37 }
 0x1a2   :  { %v329_v38 = vpop.f32.mrf.mxu1 }
 0x1a3   :  { %v205_v44 = vmax.f32 %v199_v39, 0.0 }
 0x1a4   :  { %v201_v41 = vpop.f32.mrf.mxu1 }
 0x1a5   :  { %v202_v42 = vadd.f32 %v201_v41, %v153_v40 }
 0x1a6   :  { %v330_v43 = vpop.f32.mrf.mxu1 }
 0x1a7   :  { %v206_v45 = vmax.f32 %v202_v42, 0.0 }
 0x1a9   :  { %v208_v46 = vpack.c.bf16 %v206_v45, %v205_v44 }
 0x1ab   :  { %332 = vmatpush3.bf16.msra.mxu0 %v208_v46 }
 0x1ae   :  { %334 = vmatmul.mubr.msk.bf16.vlgmr.msra.gmra.mxu0 %vm215_vm3, %v207_v47 }
 0x26e   :  { %v253_v49 = vpop.f32.mrf.mxu0 }
 0x26f   :  { %v254_v50 = vadd.f32 %v253_v49, %v213_v48 }
 0x270   :  { %v335_v51 = vpop.f32.mrf.mxu0 }
 0x271   :  { %v259_v52 = vmax.f32 %v254_v50, 0.0 }
 0x272   :  { %v256_v54 = vpop.f32.mrf.mxu0 }
 0x273   :  { %v266_v55 = vmul.f32 %v264_v53, %v259_v52 }
 0x274   :  { %v336_v57 = vpop.f32.mrf.mxu0 }
 0x275   :  { %v268_v58 = vsel %vm267_vm4, %v266_v55, 0.0 }
 0x276   :  { %v269_v59 = vrot.slane %v268_v58, 4 }
 0x278   :  { %v270_v61 = vadd.f32 %v269_v59, %v268_v58 }
 0x27a   :  { %v271_v62 = vrot.slane %v270_v61, 2 }
 0x27c   :  { %v272_v0 = vadd.f32 %v271_v62, %v270_v61 }
 0x27e   :  { %v273_v2 = vrot.slane %v272_v0, 1 }
 0x280   :  { %v274_v4 = vadd.f32 %v273_v2, %v272_v0 }
 0x282   :  { %v285_v5 = vadd.f32 %v284_v3, %v274_v4 }
 0x284   :  { %287 = vst.msk [vmem:[#allocation3] sm:$0x1] %vm286_vm5, %v285_v5 }
 0x285   :  { %358 = shalt.err (!%p355_p4)
}
 0x286   :  { %297 = dma.vmem_to_hbm [thread:$0]  %s295_s5, 16, %s481_s9, [#allocation4]  }
 0x287   :  { %367 = dma.done.wait [#allocation4], 16  }
 0x288   :  { %368 = vsyncadd [#allocation4], 4294967280 }
 0x289   :  { %301 = vsyncpa [#allocation4], 1 }

</bundles_post_ra>
